<compile_context>
chip_gen: v6e
topology: v6e:2x2x1
jax: 0.10.0
libtpu: 0.0.40
codegen_flags: <defaults>
</compile_context>

<pallas_src>
import math

import jax
import jax.numpy as jnp
from jax.experimental import pallas as pl
from jax.experimental.pallas import tpu as pltpu


def _round_up(x, n):
    return ((x + n - 1) // n) * n


def _imputation_kernel(x_ref, w_ref, b_ref, o_ref):
    # x_ref: (TM, d_pack); w_ref: (d_pack, d_pack) = blockdiag_g((mask*W).T)
    # b_ref: (1, d_pack) f32.  Plain MXU matmul with an f32 bias epilogue.
    acc = jnp.dot(x_ref[...], w_ref[...], preferred_element_type=jnp.float32)
    o_ref[...] = (acc + b_ref[...]).astype(o_ref.dtype)


def imputation_layer(x, W, b=None, *, target_tile_bytes=2 << 20):
    """GRIN ImputationLayer forward: x @ ((1 - eye(d)) * W).T + b.

    x: (..., d_in); W: (d_in, d_in); b: (d_in,) or None.
    """
    d_in = x.shape[-1]
    lead_shape = x.shape[:-1]
    m = math.prod(lead_shape) if lead_shape else 1

    itemsize = jnp.dtype(x.dtype).itemsize
    sub = {4: 8, 2: 16, 1: 32}.get(itemsize, 8)          # sublane multiple

    # Lane-packing factor: fold g rows into the 128-lane dimension.
    g = 128 // d_in if (d_in < 128 and 128 % d_in == 0) else 1
    d_pack = g * d_in

    # Pad rows only to the packing/sublane multiple (NOT up to TM).
    # TODO(synk): for very large, misaligned M this jnp.pad still costs one
    #             extra pass over x; a masked-tail second call would avoid it.
    x2 = x.reshape(m, d_in)
    m_pad = _round_up(m, g * sub)
    if m_pad != m:
        x2 = jnp.pad(x2, ((0, m_pad - m), (0, 0)))
    m_p = m_pad // g
    xp = x2.reshape(m_p, d_pack)                         # free contiguous view

    # One-time weight prep in the wrapper: mask, transpose, block-diagonalize.
    w_masked_t = ((1.0 - jnp.eye(d_in, dtype=jnp.float32))
                  * W.astype(jnp.float32)).T
    Wb = jnp.kron(jnp.eye(g, dtype=jnp.float32), w_masked_t).astype(x.dtype)
    # TODO(synk): for d_in >~ 2k a resident f32 Wb no longer fits v7x VMEM;
    #             add a column-tiled grid axis over Wb (or bf16 weights) there.

    b_arr = b if b is not None else jnp.zeros((d_in,), jnp.float32)
    b2 = jnp.tile(b_arr.astype(jnp.float32), g).reshape(1, d_pack)

    # Row tile: ~target_tile_bytes of x per grid step, sublane-aligned, and
    # capped so the grid has >= 2 steps when data allows (v7x megacore).
    row_bytes = d_pack * itemsize
    tm = max(sub, (target_tile_bytes // row_bytes) // sub * sub)
    tm = min(tm, m_p)                                    # m_p is a sub-multiple
    if m_p >= 2 * sub:
        tm = min(tm, _round_up(pl.cdiv(m_p, 2), sub))
    grid = (pl.cdiv(m_p, tm),)

    # VMEM budget: double-buffered x/out tiles + resident weight + bias.
    w_bytes = d_pack * d_pack * jnp.dtype(Wb.dtype).itemsize
    tile_bytes = tm * d_pack * itemsize
    vmem_needed = 2 * tile_bytes + 2 * tile_bytes + 2 * w_bytes + 2 * d_pack * 4
    try:
        phys_vmem = int(pltpu.get_tpu_info().vmem_capacity_bytes)
    except Exception:
        phys_vmem = 64 << 20                             # v7x per-TC minimum
    vmem_cap = (phys_vmem * 3) // 4                      # leave compiler headroom
    vmem_limit = int(min(vmem_cap, max(2 * vmem_needed, 4 << 20)))

    cost = pl.CostEstimate(
        flops=2 * m_p * d_pack * d_pack,
        transcendentals=0,
        bytes_accessed=2 * m_p * d_pack * itemsize + w_bytes + d_pack * 4,
    )

    out = pl.pallas_call(
        _imputation_kernel,
        out_shape=jax.ShapeDtypeStruct((m_p, d_pack), x.dtype),
        grid_spec=pltpu.PrefetchScalarGridSpec(
            num_scalar_prefetch=0,
            grid=grid,
            in_specs=[
                pl.BlockSpec((tm, d_pack), lambda i: (i, 0)),      # x (pipelined)
                pl.BlockSpec((d_pack, d_pack), lambda i: (0, 0)),  # Wb (resident)
                pl.BlockSpec((1, d_pack), lambda i: (0, 0)),       # bias
            ],
            out_specs=pl.BlockSpec((tm, d_pack), lambda i: (i, 0)),
        ),
        compiler_params=pltpu.CompilerParams(
            dimension_semantics=("parallel",),     # megacore-shardable on v7x
            vmem_limit_bytes=vmem_limit),
        cost_estimate=cost,
    )(xp, Wb, b2)

    out = out.reshape(m_pad, d_in)
    if m_pad != m:
        out = out[:m]
    return out.reshape(*lead_shape, d_in)


def init_params(key, d_in, bias=True):
    """Matches ImputationLayer.reset_parameters(): kaiming_uniform_(a=sqrt(5))
    on W and uniform(-1/sqrt(fan_in), 1/sqrt(fan_in)) on b."""
    kW, kb = jax.random.split(key)
    fan_in = d_in
    w_bound = math.sqrt(6.0 / ((1.0 + 5.0) * fan_in))    # = 1/sqrt(fan_in)
    W = jax.random.uniform(kW, (d_in, d_in), jnp.float32, -w_bound, w_bound)
    if bias:
        b_bound = 1.0 / math.sqrt(fan_in)
        b = jax.random.uniform(kb, (d_in,), jnp.float32, -b_bound, b_bound)
    else:
        b = jnp.zeros((d_in,), jnp.float32)
    return W, b


if __name__ == "__main__":
    key = jax.random.PRNGKey(0)
    k_x, k_p, k_x2 = jax.random.split(key, 3)

    batch, seq, d_in = 2, 8, 32
    x = jax.random.normal(k_x, (batch, seq, d_in), jnp.float32)
    W, b = init_params(k_p, d_in, bias=True)

    y = jax.block_until_ready(imputation_layer(x, W, b))

    # Reference (plain JAX) — the original masked-weight formulation.
    mask = 1.0 - jnp.eye(d_in, dtype=jnp.float32)
    y_ref = x @ (mask * W).T + b
    assert y.shape == (batch, seq, d_in)
    assert jnp.allclose(y, y_ref, atol=1e-4, rtol=1e-4)

    # Odd row count exercises the pad / partial-final-block path.
    x_odd = jax.random.normal(k_x2, (3, 5, d_in), jnp.float32)
    y_odd = jax.block_until_ready(imputation_layer(x_odd, W, b))
    y_odd_ref = x_odd @ (mask * W).T + b
    assert jnp.allclose(y_odd, y_odd_ref, atol=1e-4, rtol=1e-4)

    print("KERNEL_OK")
</pallas_src>

<mosaic_0001>
module attributes {stable_mosaic.version = 11 : i64} {
  func.func @_imputation_kernel(%arg0: i32, %arg1: memref<8x128xf32, #tpu.memory_space<vmem>>, %arg2: memref<128x128xf32, #tpu.memory_space<vmem>>, %arg3: memref<1x128xf32, #tpu.memory_space<vmem>>, %arg4: memref<8x128xf32, #tpu.memory_space<vmem>>) attributes {dimension_semantics = [#tpu.dimension_semantics<parallel>], iteration_bounds = array<i64: 1>, scalar_prefetch = 0 : i64, scratch_operands = 0 : i64, tpu.core_type = #tpu.core_type<tc>, window_params = [{transform_indices = @transform_0, window_bounds = array<i64: 8, 128>}, {pipeline_mode = #tpu.pipeline_mode<synchronous>, transform_indices = @transform_1, window_bounds = array<i64: 128, 128>}, {pipeline_mode = #tpu.pipeline_mode<synchronous>, transform_indices = @transform_2, window_bounds = array<i64: 1, 128>}, {transform_indices = @transform_3, window_bounds = array<i64: 8, 128>}]} {
    %c0 = arith.constant 0 : index
    %c0_0 = arith.constant 0 : index
    %0 = vector.load %arg1[%c0, %c0_0] : memref<8x128xf32, #tpu.memory_space<vmem>>, vector<8x128xf32>
    %c0_1 = arith.constant 0 : index
    %c0_2 = arith.constant 0 : index
    %1 = vector.load %arg2[%c0_1, %c0_2] : memref<128x128xf32, #tpu.memory_space<vmem>>, vector<128x128xf32>
    %cst = arith.constant dense<0.000000e+00> : vector<8x128xf32>
    %2 = tpu.matmul %0, %1, %cst {dimension_numbers = #tpu.dot_dimension_numbers<[1], [0], [0], [1], [0, 0, 1, 1], [], []>} : vector<8x128xf32>, vector<128x128xf32>, vector<8x128xf32> -> vector<8x128xf32>
    %c0_3 = arith.constant 0 : index
    %c0_4 = arith.constant 0 : index
    %3 = vector.load %arg3[%c0_3, %c0_4] : memref<1x128xf32, #tpu.memory_space<vmem>>, vector<1x128xf32>
    %4 = vector.broadcast %3 : vector<1x128xf32> to vector<8x128xf32>
    %5 = arith.addf %2, %4 : vector<8x128xf32>
    %c0_5 = arith.constant 0 : index
    %c0_6 = arith.constant 0 : index
    %6 = vector.load %arg4[%c0_5, %c0_6] : memref<8x128xf32, #tpu.memory_space<vmem>>, vector<8x128xf32>
    tpu.vector_store %arg4[%c0_5, %c0_6], %5 {strides = array<i32>} : memref<8x128xf32, #tpu.memory_space<vmem>>, vector<8x128xf32>,
    return
  }
  func.func @transform_0(%arg0: i32) -> (i32, i32) {
    %c0_i32 = arith.constant 0 : i32
    %c0_i32_0 = arith.constant 0 : i32
    return %arg0, %c0_i32 : i32, i32
  }
  func.func @transform_1(%arg0: i32) -> (i32, i32) {
    %c0_i32 = arith.constant 0 : i32
    %c0_i32_0 = arith.constant 0 : i32
    %c0_i32_1 = arith.constant 0 : i32
    return %c0_i32, %c0_i32_0 : i32, i32
  }
  func.func @transform_2(%arg0: i32) -> (i32, i32) {
    %c0_i32 = arith.constant 0 : i32
    %c0_i32_0 = arith.constant 0 : i32
    %c0_i32_1 = arith.constant 0 : i32
    return %c0_i32, %c0_i32_0 : i32, i32
  }
  func.func @transform_3(%arg0: i32) -> (i32, i32) {
    %c0_i32 = arith.constant 0 : i32
    %c0_i32_0 = arith.constant 0 : i32
    return %arg0, %c0_i32 : i32, i32
  }
}

</mosaic_0001>

<bundles_post_ra>
// kernel: tpu_custom_call.1
= control target key start
LH: loop header
LB: loop body
LE: loop exit
PB: predicated region body
PF: predicated region fallthrough
CT: control target
= control target key end

     0   :  { %8 = vsyncpa [#allocation3], 0  ;;  %s317_s0 = inlined_call_operand.hbm [shape: f32[8,128], index: 0, kind: input, shape index: {}]   ;;  %s318_s1 = inlined_call_operand.hbm [shape: f32[128,128], index: 1, kind: input, shape index: {}]   ;;  %s319_s2 = inlined_call_operand.vmem [shape: f32[1,128], index: 2, kind: input, shape index: {}]   ;;  %s320_s3 = inlined_call_operand.hbm [shape: f32[8,128], index: 3, kind: output, shape index: {}]  }
   0x1   :  { %9 = vsyncpa [#allocation6], 0 }
   0x2   :  { %10 = vsyncpa [#allocation4], 0  ;;  %s278_s12 = smov [#allocation2]   ;;  %s279_s14 = smov [#allocation5]  }
   0x3   :  { %s17_s13 = sshll.u32 %s278_s12, 4  ;;  %s26_s15 = sshll.u32 %s279_s14, 4  ;;  %s18_s13 = int_to_ptr.vmem [resolvable:$true] %s17_s13  ;;  %s27_s15 = int_to_ptr.vmem [resolvable:$true] %s26_s15 }
   0x4   :  { %s220_s16 = scalar_lea.vmem %s18_s13, 128  ;;  %p225_p1 = scmp.lt.s32.totalorder %s18_s13, %s18_s13 }
   0x5   :  { %p221_p0 = scmp.ne.s32.totalorder %s18_s13, %s220_s16  ;;  %p226_p2 = scmp.lt.s32.totalorder %s220_s16, %s220_s16 }
   0x7   :  { %p227_p3 = por %p226_p2, %p225_p1 }
   0x9   :  { %p228_p4 = pnand %p227_p3, %p221_p0 }
   0xb   :  { %231 = shalt.err (!%p228_p4)
}
   0xc   :  { %20 = dma.hbm_to_vmem [thread:$0]  %s317_s0, 128, %s18_s13, [#allocation3]  }
   0xd   :  { %s240_s19 = scalar_lea.vmem %s27_s15, 2048  ;;  %p245_p6 = scmp.lt.s32.totalorder %s27_s15, %s27_s15 }
   0xe   :  { %p241_p5 = scmp.ne.s32.totalorder %s27_s15, %s240_s19  ;;  %p246_p7 = scmp.lt.s32.totalorder %s240_s19, %s240_s19 }
  0x10   :  { %p247_p8 = por %p246_p7, %p245_p6 }
  0x12   :  { %p248_p9 = pnand %p247_p8, %p241_p5 }
  0x14   :  { %251 = shalt.err (!%p248_p9)
}
  0x15   :  { %s280_s20 = smov 128   ;;  %s281_s21 = smov 8  }
  0x16   :  { %32 = dma.hbm_to_vmem [thread:$0]  %s318_s1, 2048, %s27_s15, [#allocation6], %s280_s20, %s280_s20, %s281_s21  }
  0x17   :  { %272 = dma.done.wait [#allocation3], 128  }
  0x18   :  { %273 = vsyncadd [#allocation3], 4294967168 }
  0x19   :  { %274 = dma.done.wait [#allocation6], 2048  }
  0x1a   :  { %275 = vsyncadd [#allocation6], 4294965248  ;;  %v282_v0 = vmov 0.0   ;;  %vm283_vm0 = vmmov 0   ;;  %v57_v1 = vld [vmem:[#allocation5 + $0x78] sm:$0xff]  ;;  %v56_v2 = vld [vmem:[#allocation5 + $0x70] sm:$0xff] }
  0x1b   :  { %170 = vmatprep.subr.mxu0 %v282_v0  ;;  %202 = vmatprep.mubr.msk.f32.mxu0 %vm283_vm0, %v282_v0  ;;  %v55_v3 = vld [vmem:[#allocation5 + $0x68] sm:$0xff]  ;;  %v54_v4 = vld [vmem:[#allocation5 + $0x60] sm:$0xff]  ;;  %v53_v5 = vld [vmem:[#allocation5 + $0x58] sm:$0xff]  ;;  %s284_s24 = smov [#allocation7]  }
  0x1c   :  { %171 = vmatpush3.msra.mxu0 %v57_v1  ;;  %v52_v6 = vld [vmem:[#allocation5 + $0x50] sm:$0xff]  ;;  %v51_v7 = vld [vmem:[#allocation5 + $0x48] sm:$0xff]  ;;  %v50_v8 = vld [vmem:[#allocation5 + $0x40] sm:$0xff]  ;;  %s142_s25 = sshll.u32 %s284_s24, 4  ;;  %s143_s25 = int_to_ptr.vmem [resolvable:$true] %s142_s25 }
  0x1d   :  { %172 = vmatprep.subr.mxu0 %v282_v0  ;;  %v49_v9 = vld [vmem:[#allocation5 + $0x38] sm:$0xff]  ;;  %v48_v10 = vld [vmem:[#allocation5 + $0x30] sm:$0xff]  ;;  %v47_v11 = vld [vmem:[#allocation5 + $0x28] sm:$0xff]  ;;  %s252_s26 = scalar_lea.vmem %s143_s25, 128  ;;  %p257_p11 = scmp.lt.s32.totalorder %s143_s25, %s143_s25 }
  0x1e   :  { %173 = vmatpush3.msra.mxu0 %v56_v2  ;;  %v46_v12 = vld [vmem:[#allocation5 + $0x20] sm:$0xff]  ;;  %v45_v13 = vld [vmem:[#allocation5 + $0x18] sm:$0xff]  ;;  %v44_v14 = vld [vmem:[#allocation5 + $0x10] sm:$0xff]  ;;  %p253_p10 = scmp.ne.s32.totalorder %s143_s25, %s252_s26  ;;  %p258_p12 = scmp.lt.s32.totalorder %s252_s26, %s252_s26 }
  0x1f   :  { %174 = vmatprep.subr.mxu0 %v282_v0  ;;  %v43_v15 = vld [vmem:[#allocation5 + $0x8] sm:$0xff]  ;;  %v42_v16 = vld [vmem:[#allocation5] sm:$0xff]  ;;  %v41_v17 = vld [vmem:[#allocation2] sm:$0xff] }
  0x20   :  { %175 = vmatpush3.msra.mxu0 %v55_v3  ;;  %v152_v18 = vld [vmem:[%s319_s2] ss:$0 sm:$0xff]  ;;  %p259_p13 = por %p258_p12, %p257_p11 }
  0x21   :  { %176 = vmatprep.subr.mxu0 %v282_v0 }
  0x22   :  { %177 = vmatpush3.msra.mxu0 %v54_v4  ;;  %p260_p0 = pnand %p259_p13, %p253_p10 }
  0x23   :  { %178 = vmatprep.subr.mxu0 %v282_v0 }
  0x24   :  { %179 = vmatpush3.msra.mxu0 %v53_v5 }
  0x25   :  { %180 = vmatprep.subr.mxu0 %v282_v0 }
  0x26   :  { %181 = vmatpush3.msra.mxu0 %v52_v6 }
  0x27   :  { %182 = vmatprep.subr.mxu0 %v282_v0 }
  0x28   :  { %183 = vmatpush3.msra.mxu0 %v51_v7 }
  0x29   :  { %184 = vmatprep.subr.mxu0 %v282_v0 }
  0x2a   :  { %185 = vmatpush3.msra.mxu0 %v50_v8 }
  0x2b   :  { %186 = vmatprep.subr.mxu0 %v282_v0 }
  0x2c   :  { %187 = vmatpush3.msra.mxu0 %v49_v9 }
  0x2d   :  { %188 = vmatprep.subr.mxu0 %v282_v0 }
  0x2e   :  { %189 = vmatpush3.msra.mxu0 %v48_v10 }
  0x2f   :  { %190 = vmatprep.subr.mxu0 %v282_v0 }
  0x30   :  { %191 = vmatpush3.msra.mxu0 %v47_v11 }
  0x31   :  { %192 = vmatprep.subr.mxu0 %v282_v0 }
  0x32   :  { %193 = vmatpush3.msra.mxu0 %v46_v12 }
  0x33   :  { %194 = vmatprep.subr.mxu0 %v282_v0 }
  0x34   :  { %195 = vmatpush3.msra.mxu0 %v45_v13 }
  0x35   :  { %196 = vmatprep.subr.mxu0 %v282_v0 }
  0x36   :  { %197 = vmatpush3.msra.mxu0 %v44_v14 }
  0x37   :  { %198 = vmatprep.subr.mxu0 %v282_v0 }
  0x38   :  { %199 = vmatpush3.msra.mxu0 %v43_v15 }
  0x39   :  { %200 = vmatprep.subr.mxu0 %v282_v0 }
  0x3a   :  { %201 = vmatpush3.msra.mxu0 %v42_v16 }
  0x3b   :  { %203 = vmatmul.mubr.f32.vlgmr.msra.gmra.mxu0 %v41_v17 }
  0xfb   :  { %v131_v19 = vpop.f32.mrf.mxu0 }
  0xfc   :  { %v132_v20 = vadd.f32 %v152_v18, %v131_v19 }
  0xfd   :  { %v204_v21 = vpop.f32.mrf.mxu0 }
  0xfe   :  { %135 = vst [vmem:[#allocation7] sm:$0xff] %v132_v20 }
  0xff   :  { %263 = shalt.err (!%p260_p0)
}
 0x100   :  { %145 = dma.vmem_to_hbm [thread:$0]  %s143_s25, 128, %s320_s3, [#allocation4]  }
 0x101   :  { %276 = dma.done.wait [#allocation4], 128  }
 0x102   :  { %277 = vsyncadd [#allocation4], 4294967168 }
 0x103   :  { %149 = vsyncpa [#allocation3], 1 }
 0x104   :  { %150 = vsyncpa [#allocation6], 1 }
 0x105   :  { %151 = vsyncpa [#allocation4], 1 }

</bundles_post_ra>
